<compile_context>
chip_gen: v6e
topology: v6e:2x2x1
jax: 0.10.0
libtpu: 0.0.40
codegen_flags: <defaults>
</compile_context>

<pallas_src>
import functools

import jax
import jax.numpy as jnp
from jax.experimental import pallas as pl
from jax.experimental.pallas import tpu as pltpu


_GT_MAX = 8192          # max gene (reduction) tile width
_BT_DEFAULT = 256       # default batch tile


def _round_up(a: int, m: int) -> int:
    return (a + m - 1) // m * m


def _cdiv(a: int, b: int) -> int:
    return (a + b - 1) // b


def _softplus(v):
    # Matches torch.nn.Softplus(beta=1, threshold=20): x if x > 20 else log1p(exp(x))
    return jnp.where(v > 20.0, v, jnp.log1p(jnp.exp(jnp.minimum(v, 20.0))))


def _chip_traits():
    """(two_tensorcores, bf16_eup_ok, vmem_capacity_bytes) with safe fallbacks."""
    try:
        kind = jax.devices()[0].device_kind.lower().replace(" ", "")
    except Exception:
        kind = ""
    two_cores = ("v7" in kind) or ("tpu7" in kind) or ("7x" in kind)
    bf16_eup = ("v6" in kind) or two_cores          # v5-class: keep f32 EUP math
    try:
        vmem_cap = int(pltpu.get_tpu_info().vmem_capacity_bytes)
    except Exception:
        vmem_cap = 64 << 20                         # v7x-safe fallback
    return two_cores, bf16_eup, vmem_cap


def _gene_tile(G: int, gene_tile=None) -> int:
    if gene_tile is not None:
        gt = min(int(gene_tile), G)
        if gt != G:
            gt = max(128, (gt // 128) * 128)        # lane (128) constraint
        return gt
    return G if G <= _GT_MAX else _GT_MAX


def prepare_params(params, *, input_transform="log", mm_dtype=jnp.bfloat16,
                   gene_tile=None):
    """One-time weight preparation (cast / ones-column / gene-row padding).

    Run once per model, outside the per-step forward; the forward itself never
    casts or pads anything big.
    """
    if input_transform not in (None, "log", "normalize"):
        # torch module only warns; here an unsupported transform is an error.
        raise ValueError("input_transform must be None, 'log' or 'normalize'")

    w0 = params["w0"]
    G, H0 = w0.shape
    H1 = params["w1"].shape[1]
    fold_sum = input_transform != "log"
    if fold_sum:
        # Fold the per-row count sum into the MXU: one extra output column of
        # ones (MXU N dim is heavily underutilized, the column is free).
        w0 = jnp.concatenate([w0, jnp.ones((G, 1), w0.dtype)], axis=1)
    gt = _gene_tile(G, gene_tile)
    Gp = _round_up(G, gt)
    w0 = w0.astype(mm_dtype)
    if Gp != G:
        w0 = jnp.pad(w0, ((0, Gp - G), (0, 0)))     # padded gene rows are zero

    return {
        "w0": w0,
        "b0": params["b0"].reshape(1, H0).astype(jnp.float32),
        "w1": params["w1"].astype(jnp.float32),
        "b1": params["b1"].reshape(1, H1).astype(jnp.float32),
        "wo": params["wo"].reshape(1, H1).astype(jnp.float32),
        "bo": params["bo"].reshape(1, 1).astype(jnp.float32),
        "meta": dict(transform=input_transform, mm_dtype=mm_dtype,
                     g=G, h0=H0, h1=H1, gt=gt, fold_sum=fold_sum),
    }


def _encode_d_kernel(x_ref, w0_ref, b0_ref, w1_ref, b1_ref, wo_ref, bo_ref,
                     out_ref, acc_h0, acc_sum, *,
                     param, transform, mm_dtype, log1p_dtype,
                     bt, gt, h0, g_total, b_total,
                     fold_sum, slice_w0, mask_g, mask_b):
    i = pl.program_id(0)
    k = pl.program_id(1)

    @pl.when(k == 0)
    def _init():
        acc_h0[...] = jnp.zeros_like(acc_h0)
        if not fold_sum:
            acc_sum[...] = jnp.zeros_like(acc_sum)

    x_in = x_ref[...]                                 # (bt, gt) streamed dtype

    # Mask out-of-bounds tails of partial gene / batch tiles (x is NOT padded
    # in HBM, so the OOB part of a block is undefined).
    mask = None
    if mask_g:
        col = jax.lax.broadcasted_iota(jnp.int32, (bt, gt), 1)
        mask = col < (g_total - k * gt)
    if mask_b:
        row = jax.lax.broadcasted_iota(jnp.int32, (bt, gt), 0)
        bm = row < (b_total - i * bt)
        mask = bm if mask is None else (mask & bm)
    if mask is not None:
        x_in = jnp.where(mask, x_in, jnp.zeros((), x_in.dtype))

    # Current (gt, H0p) chunk of w0: either sliced from the VMEM-resident copy
    # (DMA'd from HBM only once) or the auto-streamed block.
    if slice_w0:
        start = k * gt
        if gt % 8 == 0:
            start = pl.multiple_of(start, 8)
        w0_blk = w0_ref[pl.ds(start, gt), :]
    else:
        w0_blk = w0_ref[...]

    if transform == "log":
        # Exact f32 count sum, kept separate from the log1p matmul operand.
        acc_sum[...] += jnp.sum(x_in.astype(jnp.float32), axis=-1, keepdims=True)
        # bf16 log1p on bf16-EUP chips (v6e/v7x); f32 on v5-class.
        xt = jnp.log1p(x_in.astype(log1p_dtype)).astype(mm_dtype)
    else:
        # None / 'normalize': raw counts feed the MXU; the row sum rides along
        # in the extra ones column of w0 (fold_sum).  The 'normalize' division
        # is deferred to finalize: (x / s) @ W == (x @ W) / s.
        xt = x_in.astype(mm_dtype)

    acc_h0[...] += jnp.dot(xt, w0_blk, preferred_element_type=jnp.float32)

    @pl.when(k == pl.num_programs(1) - 1)
    def _finalize():
        acc = acc_h0[...]                             # (bt, H0p) f32
        if fold_sum:
            h = acc[:, :h0]
            total = acc[:, h0:h0 + 1]
        else:
            h = acc
            total = acc_sum[...]
        log_sum = jnp.log1p(total)
        if transform == "normalize":
            # Exact division; the guard only touches degenerate rows
            # (zero counts or masked OOB batch rows).
            h = h / jnp.where(total > 0.0, total, 1.0)
        # hidden layer 0 (bias + softplus)
        h = _softplus(h + b0_ref[...])
        # hidden layer 1 (tiny matmul; f32)
        h = _softplus(jnp.dot(h, w1_ref[...], preferred_element_type=jnp.float32)
                      + b1_ref[...])
        # output layer (H1 -> 1): VPU multiply + lane reduce (not N=1 matmul)
        o = jnp.sum(h * wo_ref[...], axis=-1, keepdims=True) + bo_ref[...]
        out_ref[...] = _softplus(o + _softplus(log_sum - param) + param)


def encode_d_forward(x, prepared, *, log_count_crossover=7.0,
                     batch_tile=_BT_DEFAULT):
    """Pallas implementation of EncodeD.forward.

    x: (..., G) gene counts in any dtype (f32, bf16, int16, ...); streamed
       from HBM as-is — no wrapper-side cast/pad copy of x.
    prepared: output of prepare_params().
    Returns: (B,) float32 latent cell-size estimate (matches .squeeze()).
    """
    meta = prepared["meta"]
    G, H0, H1 = meta["g"], meta["h0"], meta["h1"]
    gt, fold_sum = meta["gt"], meta["fold_sum"]
    transform, mm_dtype = meta["transform"], meta["mm_dtype"]

    x = x.reshape(-1, G)                     # matches torch reshape(-1, input_dim)
    B = x.shape[0]
    w0 = prepared["w0"]
    Gp, H0p = w0.shape

    two_cores, bf16_eup, vmem_cap = _chip_traits()
    log1p_dtype = (jnp.bfloat16
                   if (bf16_eup and jnp.dtype(mm_dtype) == jnp.dtype(jnp.bfloat16))
                   else jnp.float32)

    # Batch tile: only force >= 2 tiles on 2-TensorCore chips (v7x).
    if B <= 8:
        bt = B                                # full-extent batch block
    else:
        target = _cdiv(B, 2) if (two_cores and B >= 16) else B
        bt = max(8, (min(batch_tile, target) // 8) * 8)

    # VMEM budget: clamp the tiles, not just the limit.
    x_bytes = jnp.dtype(x.dtype).itemsize
    mm_bytes = jnp.dtype(mm_dtype).itemsize
    small = 2 * 4 * (H0 * H1 + H0 + 2 * H1 + 1)

    def need(bt_, gt_, resident):
        w0_b = 2 * (Gp * H0p if resident else gt_ * H0p) * mm_bytes
        return (2 * bt_ * gt_ * x_bytes       # x tile, double-buffered
                + w0_b                        # w0 (resident or streamed chunk)
                + bt_ * (H0p + 1) * 4         # f32 accumulators
                + 2 * bt_ * 4                 # output block
                + small)                      # resident small params

    budget = min(int(vmem_cap * 0.70), 96 << 20)
    w0_resident = need(bt, gt, True) <= budget
    if not w0_resident:
        while need(bt, gt, False) > budget and bt > 8:
            bt = max(8, ((bt // 2) // 8) * 8)
        while need(bt, gt, False) > budget and gt % 256 == 0 and gt > 512:
            gt //= 2
    vmem_limit = int(min(max(int(need(bt, gt, w0_resident) * 1.15) + (2 << 20),
                             32 << 20),
                         int(vmem_cap * 0.85)))

    nb, nk = _cdiv(B, bt), _cdiv(Gp, gt)
    mask_g = (G % gt) != 0
    mask_b = (B % bt) != 0

    kernel = functools.partial(
        _encode_d_kernel,
        param=float(log_count_crossover), transform=transform,
        mm_dtype=mm_dtype, log1p_dtype=log1p_dtype,
        bt=bt, gt=gt, h0=H0, g_total=G, b_total=B,
        fold_sum=fold_sum, slice_w0=(w0_resident and Gp > gt),
        mask_g=mask_g, mask_b=mask_b)

    if w0_resident:
        w0_spec = pl.BlockSpec((Gp, H0p), lambda i, k: (0, 0))   # DMA'd once
    else:
        w0_spec = pl.BlockSpec((gt, H0p), lambda i, k: (k, 0))   # K-streamed

    out = pl.pallas_call(
        kernel,
        out_shape=jax.ShapeDtypeStruct((B, 1), jnp.float32),
        grid_spec=pltpu.PrefetchScalarGridSpec(
            num_scalar_prefetch=0,
            grid=(nb, nk),
            in_specs=[
                pl.BlockSpec((bt, gt), lambda i, k: (i, k)),     # x (streamed)
                w0_spec,
                pl.BlockSpec((1, H0), lambda i, k: (0, 0)),      # b0 (resident)
                pl.BlockSpec((H0, H1), lambda i, k: (0, 0)),     # w1 (resident)
                pl.BlockSpec((1, H1), lambda i, k: (0, 0)),      # b1 (resident)
                pl.BlockSpec((1, H1), lambda i, k: (0, 0)),      # wo row
                pl.BlockSpec((1, 1), lambda i, k: (0, 0)),       # bo
            ],
            out_specs=pl.BlockSpec((bt, 1), lambda i, k: (i, 0)),
            scratch_shapes=[pltpu.VMEM((bt, H0p), jnp.float32),  # x @ w0 acc
                            pltpu.VMEM((bt, 1), jnp.float32)],   # row-sum acc
        ),
        compiler_params=pltpu.CompilerParams(
            dimension_semantics=("parallel", "arbitrary"),
            vmem_limit_bytes=vmem_limit),
    )(x, w0, prepared["b0"], prepared["w1"], prepared["b1"],
      prepared["wo"], prepared["bo"])

    return out[:, 0]                          # == .squeeze() for output_dim == 1


def _reference(x, params, input_transform, log_count_crossover):
    """Pure-JAX f32 reference mirroring the PyTorch forward."""
    def sp(v):
        return jnp.where(v > 20.0, v, jnp.log1p(jnp.exp(jnp.minimum(v, 20.0))))
    xf = x.astype(jnp.float32)
    log_sum = jnp.log1p(jnp.sum(xf, axis=-1, keepdims=True))
    if input_transform == "log":
        xt = jnp.log1p(xf)
    elif input_transform == "normalize":
        xt = xf / jnp.sum(xf, axis=-1, keepdims=True)
    else:
        xt = xf
    h = sp(xt @ params["w0"] + params["b0"])
    h = sp(h @ params["w1"] + params["b1"])
    o = h @ params["wo"] + params["bo"]
    return sp(o + sp(log_sum - log_count_crossover) + log_count_crossover)[:, 0]


def init_params(key, input_dim, hidden_dims, output_dim):
    """nn.Linear-style init (uniform +/- 1/sqrt(fan_in)), (in, out) layout."""
    params = {}
    dims = [input_dim] + list(hidden_dims)
    layers = [(f"w{i}", f"b{i}", dims[i], dims[i + 1]) for i in range(len(hidden_dims))]
    layers.append(("wo", "bo", hidden_dims[-1], output_dim))
    for wname, bname, fan_in, fan_out in layers:
        key, kw, kb = jax.random.split(key, 3)
        bound = 1.0 / jnp.sqrt(fan_in)
        params[wname] = jax.random.uniform(kw, (fan_in, fan_out), jnp.float32,
                                           -bound, bound)
        params[bname] = jax.random.uniform(kb, (fan_out,), jnp.float32,
                                           -bound, bound)
    return params


if __name__ == "__main__":
    key = jax.random.PRNGKey(0)

    # ---- Case 1: 16 barcodes x 256 genes, hidden [64, 32]; gene_tile=128
    #      forces two gene tiles (exercises the K-axis accumulation). ----
    B, G = 16, 256
    hidden_dims = [64, 32]
    key, kx, kp = jax.random.split(key, 3)
    x_f32 = jax.random.poisson(kx, 3.0, (B, G)).astype(jnp.float32)  # counts
    params = init_params(kp, G, hidden_dims, 1)
    ref_log = _reference(x_f32, params, "log", 7.0)

    # (1a) fast path: counts stored at half width (bf16 is exact for counts
    #      < 256; int16 also streams at half width for larger exact counts),
    #      bf16 MXU operands, bf16 log1p on v6e/v7x.
    prep_log_bf16 = prepare_params(params, input_transform="log",
                                   mm_dtype=jnp.bfloat16, gene_tile=128)
    x_bf16 = x_f32.astype(jnp.bfloat16)     # storage-format cast, done once
    out = jax.block_until_ready(encode_d_forward(x_bf16, prep_log_bf16))
    assert out.shape == (B,)
    assert jnp.allclose(out, ref_log, rtol=2e-2, atol=2e-2), (out, ref_log)

    # (1b) exact-semantics check: f32 everywhere, tight tolerance.
    prep_log_f32 = prepare_params(params, input_transform="log",
                                  mm_dtype=jnp.float32, gene_tile=128)
    out = jax.block_until_ready(encode_d_forward(x_f32, prep_log_f32))
    assert jnp.allclose(out, ref_log, rtol=1e-4, atol=1e-5), (out, ref_log)

    # (1c) 'normalize': row sum folded into the MXU via the ones column,
    #      exact deferred division.
    ref_norm = _reference(x_f32, params, "normalize", 7.0)
    prep_norm = prepare_params(params, input_transform="normalize",
                               mm_dtype=jnp.float32, gene_tile=128)
    out = jax.block_until_ready(encode_d_forward(x_f32, prep_norm))
    assert jnp.allclose(out, ref_norm, rtol=1e-3, atol=1e-4), (out, ref_norm)

    # ---- Case 2: non-divisible shapes (B=20, G=200) exercise the in-kernel
    #      tail masking on both axes (no padding of x in HBM). ----
    B2, G2 = 20, 200
    key, kx2, kp2 = jax.random.split(key, 3)
    x2 = jax.random.poisson(kx2, 3.0, (B2, G2)).astype(jnp.float32)
    params2 = init_params(kp2, G2, hidden_dims, 1)

    ref2_log = _reference(x2, params2, "log", 7.0)
    prep2_log = prepare_params(params2, input_transform="log",
                               mm_dtype=jnp.float32, gene_tile=128)
    out = jax.block_until_ready(encode_d_forward(x2, prep2_log))
    assert out.shape == (B2,)
    assert jnp.allclose(out, ref2_log, rtol=1e-4, atol=1e-5), (out, ref2_log)

    ref2_norm = _reference(x2, params2, "normalize", 7.0)
    prep2_norm = prepare_params(params2, input_transform="normalize",
                                mm_dtype=jnp.float32, gene_tile=128)
    out = jax.block_until_ready(encode_d_forward(x2, prep2_norm))
    assert jnp.allclose(out, ref2_norm, rtol=1e-3, atol=1e-4), (out, ref2_norm)

    print("KERNEL_OK")
</pallas_src>

<mosaic_0001>
module attributes {stable_mosaic.version = 11 : i64} {
  func.func @_encode_d_kernel(%arg0: i32, %arg1: i32, %arg2: memref<16x128xbf16, #tpu.memory_space<vmem>>, %arg3: memref<256x64xbf16, #tpu.memory_space<vmem>>, %arg4: memref<1x64xf32, #tpu.memory_space<vmem>>, %arg5: memref<64x32xf32, #tpu.memory_space<vmem>>, %arg6: memref<1x32xf32, #tpu.memory_space<vmem>>, %arg7: memref<1x32xf32, #tpu.memory_space<vmem>>, %arg8: memref<1x1xf32, #tpu.memory_space<vmem>>, %arg9: memref<16x1xf32, #tpu.memory_space<vmem>>, %arg10: memref<16x64xf32, #tpu.memory_space<vmem>>, %arg11: memref<16x1xf32, #tpu.memory_space<vmem>>) attributes {dimension_semantics = [#tpu.dimension_semantics<parallel>, #tpu.dimension_semantics<arbitrary>], iteration_bounds = array<i64: 1, 2>, scalar_prefetch = 0 : i64, scratch_operands = 2 : i64, tpu.core_type = #tpu.core_type<tc>, window_params = [{transform_indices = @transform_0, window_bounds = array<i64: 16, 128>}, {pipeline_mode = #tpu.pipeline_mode<synchronous>, transform_indices = @transform_1, window_bounds = array<i64: 256, 64>}, {pipeline_mode = #tpu.pipeline_mode<synchronous>, transform_indices = @transform_2, window_bounds = array<i64: 1, 64>}, {pipeline_mode = #tpu.pipeline_mode<synchronous>, transform_indices = @transform_3, window_bounds = array<i64: 64, 32>}, {pipeline_mode = #tpu.pipeline_mode<synchronous>, transform_indices = @transform_4, window_bounds = array<i64: 1, 32>}, {pipeline_mode = #tpu.pipeline_mode<synchronous>, transform_indices = @transform_5, window_bounds = array<i64: 1, 32>}, {pipeline_mode = #tpu.pipeline_mode<synchronous>, transform_indices = @transform_6, window_bounds = array<i64: 1, 1>}, {transform_indices = @transform_7, window_bounds = array<i64: 16, 1>}]} {
    %c0_i32 = arith.constant 0 : i32
    %0 = arith.cmpi eq, %arg1, %c0_i32 : i32
    %1 = arith.extui %0 : i1 to i32
    %c0_i32_0 = arith.constant 0 : i32
    %2 = arith.cmpi ne, %1, %c0_i32_0 : i32
    scf.if %2 {
      %cst_13 = arith.constant 0.000000e+00 : f32
      %24 = vector.broadcast %cst_13 : f32 to vector<16x64xf32>
      %c0_14 = arith.constant 0 : index
      %c0_15 = arith.constant 0 : index
      %25 = vector.load %arg10[%c0_14, %c0_15] : memref<16x64xf32, #tpu.memory_space<vmem>>, vector<16x64xf32>
      tpu.vector_store %arg10[%c0_14, %c0_15], %24 {strides = array<i32>} : memref<16x64xf32, #tpu.memory_space<vmem>>, vector<16x64xf32>,
      %cst_16 = arith.constant 0.000000e+00 : f32
      %26 = vector.broadcast %cst_16 : f32 to vector<16x1xf32>
      %c0_17 = arith.constant 0 : index
      %c0_18 = arith.constant 0 : index
      %27 = vector.load %arg11[%c0_17, %c0_18] : memref<16x1xf32, #tpu.memory_space<vmem>>, vector<16x1xf32>
      tpu.vector_store %arg11[%c0_17, %c0_18], %26 {strides = array<i32>} : memref<16x1xf32, #tpu.memory_space<vmem>>, vector<16x1xf32>,
    } else {
    }
    %c0 = arith.constant 0 : index
    %c0_1 = arith.constant 0 : index
    %3 = vector.load %arg2[%c0, %c0_1] : memref<16x128xbf16, #tpu.memory_space<vmem>>, vector<16x128xbf16>
    %c128_i32 = arith.constant 128 : i32
    %4 = arith.muli %arg1, %c128_i32 : i32
    %5 = tpu.assume_multiple %4, 8 : i32
    %6 = arith.index_cast %5 : i32 to index
    %c0_2 = arith.constant 0 : index
    %7 = vector.load %arg3[%6, %c0_2] : memref<256x64xbf16, #tpu.memory_space<vmem>>, vector<128x64xbf16>
    %c0_3 = arith.constant 0 : index
    %c0_4 = arith.constant 0 : index
    %8 = vector.load %arg11[%c0_3, %c0_4] : memref<16x1xf32, #tpu.memory_space<vmem>>, vector<16x1xf32>
    %9 = arith.extf %3 : vector<16x128xbf16> to vector<16x128xf32>
    %cst = arith.constant dense<0.000000e+00> : vector<16xf32>
    %10 = vector.multi_reduction <add>, %9, %cst [1] : vector<16x128xf32> to vector<16xf32>
    %11 = vector.shape_cast %10 : vector<16xf32> to vector<16x1xf32>
    %12 = arith.addf %8, %11 : vector<16x1xf32>
    %c0_5 = arith.constant 0 : index
    %c0_6 = arith.constant 0 : index
    %13 = vector.load %arg11[%c0_5, %c0_6] : memref<16x1xf32, #tpu.memory_space<vmem>>, vector<16x1xf32>
    tpu.vector_store %arg11[%c0_5, %c0_6], %12 {strides = array<i32>} : memref<16x1xf32, #tpu.memory_space<vmem>>, vector<16x1xf32>,
    %14 = arith.extf %3 : vector<16x128xbf16> to vector<16x128xf32>
    %15 = math.log1p %14 : vector<16x128xf32>
    %16 = arith.truncf %15 : vector<16x128xf32> to vector<16x128xbf16>
    %c0_7 = arith.constant 0 : index
    %c0_8 = arith.constant 0 : index
    %17 = vector.load %arg10[%c0_7, %c0_8] : memref<16x64xf32, #tpu.memory_space<vmem>>, vector<16x64xf32>
    %cst_9 = arith.constant dense<0.000000e+00> : vector<16x64xf32>
    %18 = tpu.matmul %16, %7, %cst_9 {dimension_numbers = #tpu.dot_dimension_numbers<[1], [0], [0], [1], [0, 0, 1, 1], [], []>} : vector<16x128xbf16>, vector<128x64xbf16>, vector<16x64xf32> -> vector<16x64xf32>
    %19 = arith.addf %17, %18 : vector<16x64xf32>
    %c0_10 = arith.constant 0 : index
    %c0_11 = arith.constant 0 : index
    %20 = vector.load %arg10[%c0_10, %c0_11] : memref<16x64xf32, #tpu.memory_space<vmem>>, vector<16x64xf32>
    tpu.vector_store %arg10[%c0_10, %c0_11], %19 {strides = array<i32>} : memref<16x64xf32, #tpu.memory_space<vmem>>, vector<16x64xf32>,
    %c1_i32 = arith.constant 1 : i32
    %21 = arith.cmpi eq, %arg1, %c1_i32 : i32
    %22 = arith.extui %21 : i1 to i32
    %c0_i32_12 = arith.constant 0 : i32
    %23 = arith.cmpi ne, %22, %c0_i32_12 : i32
    scf.if %23 {
      %c0_13 = arith.constant 0 : index
      %c0_14 = arith.constant 0 : index
      %24 = vector.load %arg10[%c0_13, %c0_14] : memref<16x64xf32, #tpu.memory_space<vmem>>, vector<16x64xf32>
      %c0_15 = arith.constant 0 : index
      %c0_16 = arith.constant 0 : index
      %25 = vector.load %arg11[%c0_15, %c0_16] : memref<16x1xf32, #tpu.memory_space<vmem>>, vector<16x1xf32>
      %26 = math.log1p %25 : vector<16x1xf32>
      %c0_17 = arith.constant 0 : index
      %c0_18 = arith.constant 0 : index
      %27 = vector.load %arg4[%c0_17, %c0_18] : memref<1x64xf32, #tpu.memory_space<vmem>>, vector<1x64xf32>
      %28 = vector.broadcast %27 : vector<1x64xf32> to vector<16x64xf32>
      %29 = arith.addf %24, %28 : vector<16x64xf32>
      %cst_19 = arith.constant 2.000000e+01 : f32
      %30 = vector.broadcast %cst_19 : f32 to vector<16x64xf32>
      %31 = arith.cmpf ogt, %29, %30 : vector<16x64xf32>
      %cst_20 = arith.constant 2.000000e+01 : f32
      %32 = vector.broadcast %cst_20 : f32 to vector<16x64xf32>
      %33 = arith.minimumf %29, %32 : vector<16x64xf32>
      %34 = math.exp %33 : vector<16x64xf32>
      %35 = math.log1p %34 : vector<16x64xf32>
      %36 = arith.select %31, %29, %35 : vector<16x64xi1>, vector<16x64xf32>
      %c0_21 = arith.constant 0 : index
      %c0_22 = arith.constant 0 : index
      %37 = vector.load %arg5[%c0_21, %c0_22] : memref<64x32xf32, #tpu.memory_space<vmem>>, vector<64x32xf32>
      %cst_23 = arith.constant dense<0.000000e+00> : vector<16x32xf32>
      %38 = tpu.matmul %36, %37, %cst_23 {dimension_numbers = #tpu.dot_dimension_numbers<[1], [0], [0], [1], [0, 0, 1, 1], [], []>} : vector<16x64xf32>, vector<64x32xf32>, vector<16x32xf32> -> vector<16x32xf32>
      %c0_24 = arith.constant 0 : index
      %c0_25 = arith.constant 0 : index
      %39 = vector.load %arg6[%c0_24, %c0_25] : memref<1x32xf32, #tpu.memory_space<vmem>>, vector<1x32xf32>
      %40 = vector.broadcast %39 : vector<1x32xf32> to vector<16x32xf32>
      %41 = arith.addf %38, %40 : vector<16x32xf32>
      %cst_26 = arith.constant 2.000000e+01 : f32
      %42 = vector.broadcast %cst_26 : f32 to vector<16x32xf32>
      %43 = arith.cmpf ogt, %41, %42 : vector<16x32xf32>
      %cst_27 = arith.constant 2.000000e+01 : f32
      %44 = vector.broadcast %cst_27 : f32 to vector<16x32xf32>
      %45 = arith.minimumf %41, %44 : vector<16x32xf32>
      %46 = math.exp %45 : vector<16x32xf32>
      %47 = math.log1p %46 : vector<16x32xf32>
      %48 = arith.select %43, %41, %47 : vector<16x32xi1>, vector<16x32xf32>
      %c0_28 = arith.constant 0 : index
      %c0_29 = arith.constant 0 : index
      %49 = vector.load %arg7[%c0_28, %c0_29] : memref<1x32xf32, #tpu.memory_space<vmem>>, vector<1x32xf32>
      %50 = vector.broadcast %49 : vector<1x32xf32> to vector<16x32xf32>
      %51 = arith.mulf %48, %50 : vector<16x32xf32>
      %cst_30 = arith.constant dense<0.000000e+00> : vector<16xf32>
      %52 = vector.multi_reduction <add>, %51, %cst_30 [1] : vector<16x32xf32> to vector<16xf32>
      %53 = vector.shape_cast %52 : vector<16xf32> to vector<16x1xf32>
      %c0_31 = arith.constant 0 : index
      %c0_32 = arith.constant 0 : index
      %54 = vector.load %arg8[%c0_31, %c0_32] : memref<1x1xf32, #tpu.memory_space<vmem>>, vector<1x1xf32>
      %55 = vector.broadcast %54 : vector<1x1xf32> to vector<16x1xf32>
      %56 = arith.addf %53, %55 : vector<16x1xf32>
      %cst_33 = arith.constant 7.000000e+00 : f32
      %57 = vector.broadcast %cst_33 : f32 to vector<16x1xf32>
      %58 = arith.subf %26, %57 : vector<16x1xf32>
      %cst_34 = arith.constant 2.000000e+01 : f32
      %59 = vector.broadcast %cst_34 : f32 to vector<16x1xf32>
      %60 = arith.cmpf ogt, %58, %59 : vector<16x1xf32>
      %cst_35 = arith.constant 2.000000e+01 : f32
      %61 = vector.broadcast %cst_35 : f32 to vector<16x1xf32>
      %62 = arith.minimumf %58, %61 : vector<16x1xf32>
      %63 = math.exp %62 : vector<16x1xf32>
      %64 = math.log1p %63 : vector<16x1xf32>
      %65 = arith.select %60, %58, %64 : vector<16x1xi1>, vector<16x1xf32>
      %66 = arith.addf %56, %65 : vector<16x1xf32>
      %cst_36 = arith.constant 7.000000e+00 : f32
      %67 = vector.broadcast %cst_36 : f32 to vector<16x1xf32>
      %68 = arith.addf %66, %67 : vector<16x1xf32>
      %cst_37 = arith.constant 2.000000e+01 : f32
      %69 = vector.broadcast %cst_37 : f32 to vector<16x1xf32>
      %70 = arith.cmpf ogt, %68, %69 : vector<16x1xf32>
      %cst_38 = arith.constant 2.000000e+01 : f32
      %71 = vector.broadcast %cst_38 : f32 to vector<16x1xf32>
      %72 = arith.minimumf %68, %71 : vector<16x1xf32>
      %73 = math.exp %72 : vector<16x1xf32>
      %74 = math.log1p %73 : vector<16x1xf32>
      %75 = arith.select %70, %68, %74 : vector<16x1xi1>, vector<16x1xf32>
      %c0_39 = arith.constant 0 : index
      %c0_40 = arith.constant 0 : index
      %76 = vector.load %arg9[%c0_39, %c0_40] : memref<16x1xf32, #tpu.memory_space<vmem>>, vector<16x1xf32>
      tpu.vector_store %arg9[%c0_39, %c0_40], %75 {strides = array<i32>} : memref<16x1xf32, #tpu.memory_space<vmem>>, vector<16x1xf32>,
    } else {
    }
    return
  }
  func.func @transform_0(%arg0: i32, %arg1: i32) -> (i32, i32) {
    %c0_i32 = arith.constant 0 : i32
    return %arg0, %arg1 : i32, i32
  }
  func.func @transform_1(%arg0: i32, %arg1: i32) -> (i32, i32) {
    %c0_i32 = arith.constant 0 : i32
    %c0_i32_0 = arith.constant 0 : i32
    %c0_i32_1 = arith.constant 0 : i32
    return %c0_i32, %c0_i32_0 : i32, i32
  }
  func.func @transform_2(%arg0: i32, %arg1: i32) -> (i32, i32) {
    %c0_i32 = arith.constant 0 : i32
    %c0_i32_0 = arith.constant 0 : i32
    %c0_i32_1 = arith.constant 0 : i32
    return %c0_i32, %c0_i32_0 : i32, i32
  }
  func.func @transform_3(%arg0: i32, %arg1: i32) -> (i32, i32) {
    %c0_i32 = arith.constant 0 : i32
    %c0_i32_0 = arith.constant 0 : i32
    %c0_i32_1 = arith.constant 0 : i32
    return %c0_i32, %c0_i32_0 : i32, i32
  }
  func.func @transform_4(%arg0: i32, %arg1: i32) -> (i32, i32) {
    %c0_i32 = arith.constant 0 : i32
    %c0_i32_0 = arith.constant 0 : i32
    %c0_i32_1 = arith.constant 0 : i32
    return %c0_i32, %c0_i32_0 : i32, i32
  }
  func.func @transform_5(%arg0: i32, %arg1: i32) -> (i32, i32) {
    %c0_i32 = arith.constant 0 : i32
    %c0_i32_0 = arith.constant 0 : i32
    %c0_i32_1 = arith.constant 0 : i32
    return %c0_i32, %c0_i32_0 : i32, i32
  }
  func.func @transform_6(%arg0: i32, %arg1: i32) -> (i32, i32) {
    %c0_i32 = arith.constant 0 : i32
    %c0_i32_0 = arith.constant 0 : i32
    %c0_i32_1 = arith.constant 0 : i32
    return %c0_i32, %c0_i32_0 : i32, i32
  }
  func.func @transform_7(%arg0: i32, %arg1: i32) -> (i32, i32) {
    %c0_i32 = arith.constant 0 : i32
    %c0_i32_0 = arith.constant 0 : i32
    return %arg0, %c0_i32 : i32, i32
  }
}

</mosaic_0001>

<bundles_post_ra>
// kernel: tpu_custom_call.1
= control target key start
LH: loop header
LB: loop body
LE: loop exit
PB: predicated region body
PF: predicated region fallthrough
CT: control target
= control target key end

     0   :  { %s1251_s0 = inlined_call_operand.vmem [shape: bf16[16,256], index: 0, kind: input, shape index: {}]   ;;  %s1252_s1 = inlined_call_operand.vmem [shape: bf16[256,64], index: 1, kind: input, shape index: {}]   ;;  %s1253_s2 = inlined_call_operand.vmem [shape: f32[1,64], index: 2, kind: input, shape index: {}]   ;;  %s1254_s3 = inlined_call_operand.vmem [shape: f32[64,32], index: 3, kind: input, shape index: {}]   ;;  %s1255_s4 = inlined_call_operand.vmem [shape: f32[1,32], index: 4, kind: input, shape index: {}]   ;;  %s1256_s5 = inlined_call_operand.vmem [shape: f32[1,32], index: 5, kind: input, shape index: {}]   ;;  %s1257_s6 = inlined_call_operand.<no memory space> [shape: f32[1,1], index: 6, kind: input, shape index: {}]   ;;  %s1258_s7 = inlined_call_operand.vmem [shape: f32[16,1], index: 7, kind: output, shape index: {}]  }
   0x1   :  { %v12_v0 = vstv %s1257_s6 }
   0x2   :  { %13 = vst [vmem:[#allocation4] sm:$0x1] %v12_v0 }
   0x3   :  { %s1127_s26 = smov 0   ;;  %s1129_s27 = smov 0  }
   0x4   :  { %s1131_s28 = smov 0   ;;  %s1133_s29 = smov 0  }
   0x5   :  { %s1135_s30 = smov 0  }
   0x6 LB: > { %s28_s6 = sadd.s32 1, %s1075_s29  ;;  %p47_p1 = scmp.ne.s32.totalorder %s1067_s27, %s1063_s26  ;;  %s1079_s30 = sphi %s1135_s30, %s19_s30   ;;  %s1075_s29 = sphi %s1133_s29, %s1262_s29   ;;  %s1071_s28 = sphi %s1131_s28, %s1261_s28   ;;  %s1067_s27 = sphi %s1129_s27, %s1260_s27   ;;  %s1063_s26 = sphi %s1127_s26, %s1259_s26  }
   0x7   : > { %p29_p0 = scmp.ge.s32.totalorder %s28_s6, 2  ;;  %p48_p2 = scmp.eq.s32.totalorder %s1079_s30, 0 }
   0x8   : > { %s40_s9 = sadd.s32 1, %s1067_s27  ;;  %p859_p5 = scmp.ge.s32.totalorder %s1079_s30, 2 }
   0x9   : > { %s1264_s6 = smov (%p29_p0, %s28_s6), 0  ;;  %p49_p3 = por %p48_p2, %p47_p1 }
   0xa   : > { %s36_s8 = ssub.s32 %s1075_s29, %s1264_s6  ;;  %243 = sbr.rel (%p859_p5) target bundleno = 20 (0x14), region = 40 }
   0xb   : > { %p38_p4 = scmp.eq.s32.totalorder %s36_s8, 0 }
   0xd   : > { %s1162_s10 = scalar_select %p38_p4, %s1067_s27, %s40_s9  }
   0xf   : > { %246 = sbr.rel (!%p49_p3) target bundleno = 20 (0x14), region = 44  ;;  %s248_s11 = sand.u32 (%p49_p3), 1, %s1067_s27  }
  0x10   : > { %s861_s12 = sshll.u32 (%p49_p3), %s1075_s29, 2  ;;  %s860_s13 = sshll.u32 (%p49_p3), %s248_s11, 3 }
  0x11   : > { %s255_s16 = scalar_lea.vmem (%p49_p3), %s1251_s0, %s861_s12  ;;  %s250_s17 = scalar_lea.vmem (%p49_p3), [#allocation5], %s860_s13 }
  0x12   : > { %v272_v1 = vld [vmem:[%s255_s16] sm:$0xf] (%p49_p3)  ;;  %v274_v2 = vld [vmem:[%s255_s16 + $0x8] sm:$0xf] (%p49_p3) }
  0x13   : > { %273 = vst [vmem:[%s250_s17] sm:$0xf] (%p49_p3), %v272_v1  ;;  %275 = vst [vmem:[%s250_s17 + $0x4] sm:$0xf] (%p49_p3), %v274_v2 }
  0x14 PF: > { %p862_p6 = scmp.ge.s32.totalorder %s1079_s30, 1  ;;  %p302_p7 = scmp.lt.s32.totalorder %s1079_s30, 3 }
  0x16   : > { %p303_p8 = pnand %p862_p6, %p302_p7 }
  0x17   : > { %s309_s18 = sand.u32 (!%p303_p8), 1, %s1063_s26   ;;  %p864_p9 = scmp.ne.s32.totalorder (!%p303_p8), %s1071_s28, 0 }
  0x18   : > { %306 = sbr.rel (%p303_p8) target bundleno = 745 (0x2e9), region = 85  ;;  %s863_s19 = sshll.u32 (!%p303_p8), %s309_s18, 3 }
  0x19   : > { %s311_s20 = scalar_lea.vmem (!%p303_p8), [#allocation5], %s863_s19 }
  0x1d   : > { %351 = sbr.rel (%p864_p9) target bundleno = 37 (0x25), region = 93 }
  0x22   : > { %vm352_vm0 = vcmask 523264   ;;  %vm355_vm1 = vcmask 7168   ;;  %v1081_v3 = vmov 0.0  }
  0x23   : > { %353 = vst.msk [vmem:[#allocation2] sm:$0xff] %vm352_vm0, %v1081_v3  ;;  %354 = vst.msk [vmem:[#allocation2 + $0x8] sm:$0xff] %vm352_vm0, %v1081_v3 }
  0x24   : > { %356 = vst.msk [vmem:[#allocation3] sm:$0xff] %vm355_vm1, %v1081_v3  ;;  %357 = vst.msk [vmem:[#allocation3 + $0x8] sm:$0xff] %vm355_vm1, %v1081_v3 }
  0x25 PF: > { %s865_s21 = sshll.u32 %s1071_s28, 7  ;;  %v889_v4 = vld [vmem:[%s311_s20] sm:$0xff]   ;;  %v1082_v5 = vmov 0.0   ;;  %vm1083_vm2 = vmmov 0   ;;  %vm391_vm5 = vcmask 7168   ;;  %vm506_vm6 = vcmask 523264  }
  0x26   : > { %911 = vmatprep.subr.bf16.mxu0 %v1082_v5  ;;  %s361_s22 = sshra.s32 %s865_s21, 3  ;;  %927 = vmatprep.mubr.msk.bf16.mxu0 %vm1083_vm2, %v1082_v5  ;;  %v890_v6 = vunpack.c.l.bf16 %v889_v4  ;;  %v891_v7 = vunpack.c.h.bf16 %v889_v4  ;;  %p875_p10 = scmp.ne.s32.totalorder %s1071_s28, 1 }
  0x27   : > { %s866_s23 = sshll.u32 %s361_s22, 2 }
  0x28   : > { %s1178_s26 = scalar_lea.vmem %s1252_s1, %s866_s23  ;;  %385 = vadd.xlane.f32.xlu0 %v890_v6  ;;  %v394_v9 = vadd.f32 1.0, %v890_v6  ;;  %v403_v11 = vadd.f32 1.0, %v891_v7  ;;  %v397_v15 = vmul.f32 -0.5, %v890_v6  ;;  %v406_v16 = vmul.f32 -0.5, %v891_v7 }
  0x29   : > { %v993_v8 = vld [vmem:[%s1178_s26 + $0x38] sm:$0xff]   ;;  %v994_v10 = vld [vmem:[%s1178_s26 + $0x30] sm:$0xff]   ;;  %v995_v12 = vld [vmem:[%s1178_s26 + $0x28] sm:$0xff]   ;;  %v400_v22 = vand.u32 2147483647, %v890_v6 }
  0x2a   : > { %912 = vmatpush3.bf16.msra.mxu0 %v993_v8  ;;  %1001 = vlog2.f32 %v394_v9  ;;  %v996_v13 = vld [vmem:[%s1178_s26 + $0x20] sm:$0xff]   ;;  %v997_v14 = vld [vmem:[%s1178_s26 + $0x18] sm:$0xff]   ;;  %v998_v18 = vld [vmem:[%s1178_s26 + $0x10] sm:$0xff]   ;;  %v398_v19 = vadd.f32 1.0, %v397_v15  ;;  %v407_v20 = vadd.f32 1.0, %v406_v16 }
  0x2b   : > { %913 = vmatprep.subr.bf16.mxu0 %v1082_v5  ;;  %1003 = vlog2.f32 %v403_v11  ;;  %v409_v23 = vand.u32 2147483647, %v891_v7  ;;  %v999_v24 = vld [vmem:[%s1178_s26 + $0x8] sm:$0xff]   ;;  %vm401_vm3 = vcmp.lt.f32.partialorder %v400_v22, 0.0004427343  ;;  %v1000_v29 = vld [vmem:[%s1178_s26] sm:$0xff]  }
  0x2c   : > { %387 = vadd.xlane.f32.xlu0 %v891_v7  ;;  %v399_v26 = vmul.f32 %v890_v6, %v398_v19  ;;  %v408_v28 = vmul.f32 %v891_v7, %v407_v20  ;;  %v381_v33 = vld [vmem:[#allocation3] sm:$0xff]  ;;  %v382_v36 = vld [vmem:[#allocation3 + $0x8] sm:$0xff]  ;;  %v413_v39 = vld [vmem:[#allocation2] sm:$0xff] }
  0x2d   : > { %vm410_vm4 = vcmp.lt.f32.partialorder %v409_v23, 0.0004427343  ;;  %v414_v43 = vld [vmem:[#allocation2 + $0x8] sm:$0xff] }
  0x2e   : > { %914 = vmatpush3.bf16.msra.mxu0 %v994_v10 }
  0x2f   : > { %915 = vmatprep.subr.bf16.mxu0 %v1082_v5 }
  0x32   : > { %916 = vmatpush3.bf16.msra.mxu0 %v995_v12 }
  0x33   : > { %917 = vmatprep.subr.bf16.mxu0 %v1082_v5 }
  0x36   : > { %918 = vmatpush3.bf16.msra.mxu0 %v996_v13 }
  0x37   : > { %919 = vmatprep.subr.bf16.mxu0 %v1082_v5  ;;  %v1002_v17 = vpop.eup %1001 }
  0x38   : > { %v1004_v21 = vpop.eup %1003  ;;  %v396_v25 = vmul.f32 0.6931472, %v1002_v17 }
  0x39   : > { %v405_v27 = vmul.f32 0.6931472, %v1004_v21 }
  0x3a   : > { %920 = vmatpush3.bf16.msra.mxu0 %v997_v14  ;;  %v402_v30 = vsel %vm401_vm3, %v399_v26, %v396_v25 }
  0x3b   : > { %921 = vmatprep.subr.bf16.mxu0 %v1082_v5  ;;  %v411_v31 = vsel %vm410_vm4, %v408_v28, %v405_v27 }
  0x3c   : > { %v412_v32 = vpack.c.bf16 %v411_v31, %v402_v30 }
  0x3e   : > { %922 = vmatpush3.bf16.msra.mxu0 %v998_v18 }
  0x3f   : > { %923 = vmatprep.subr.bf16.mxu0 %v1082_v5 }
  0x42   : > { %924 = vmatpush3.bf16.msra.mxu0 %v999_v24 }
  0x43   : > { %925 = vmatprep.subr.bf16.mxu0 %v1082_v5 }
  0x46   : > { %926 = vmatpush3.bf16.msra.mxu0 %v1000_v29 }
  0x49   : > { %928 = vmatmul.mubr.bf16.vlgmr.msra.gmra.mxu0 %v412_v32 }
  0xb1   : > { %v386_v34 = vpop.xlane.xlu0 %385 }
  0xb2   : > { %v389_v35 = vadd.f32 %v386_v34, %v381_v33 }
  0xb4   : > { %392 = vst.msk [vmem:[#allocation3] sm:$0xff] %vm391_vm5, %v389_v35 }
  0xb5   : > { %v388_v37 = vpop.xlane.xlu0 %387 }
  0xb6   : > { %v390_v38 = vadd.f32 %v388_v37, %v382_v36 }
  0xb8   : > { %393 = vst.msk [vmem:[#allocation3 + $0x8] sm:$0xff] %vm391_vm5, %v390_v38 }
 0x109   : > { %v497_v40 = vpop.f32.mrf.mxu0 }
 0x10a   : > { %v504_v41 = vadd.f32 %v497_v40, %v413_v39 }
 0x10b   : > { %v929_v42 = vpop.f32.mrf.mxu0 }
 0x10c   : > { %507 = vst.msk [vmem:[#allocation2] sm:$0xff] %vm506_vm6, %v504_v41  ;;  %512 = sbr.rel (%p875_p10) target bundleno = 745 (0x2e9), region = 97 }
 0x10d   : > { %v500_v44 = vpop.f32.mrf.mxu0 }
 0x10e   : > { %v505_v45 = vadd.f32 %v500_v44, %v414_v43 }
 0x10f   : > { %v930_v46 = vpop.f32.mrf.mxu0 }
 0x110   : > { %508 = vst.msk [vmem:[#allocation2 + $0x8] sm:$0xff] %vm506_vm6, %v505_v45 }
 0x111   : > { %v579_v47 = vld [vmem:[%s1254_s3 + $0x38] sm:$0xff]  ;;  %v578_v48 = vld [vmem:[%s1254_s3 + $0x30] sm:$0xff]  ;;  %v577_v49 = vld [vmem:[%s1254_s3 + $0x28] sm:$0xff]  ;;  %vm705_vm15 = vcmask 261120  }
 0x112   : > { %931 = vmatprep.subr.mxu0 %v579_v47  ;;  %v876_v51 = vld [vmem:[%s1253_s2] ss:$0 sm:$0xff]  ;;  %v575_v56 = vld [vmem:[%s1254_s3 + $0x18] sm:$0xff]  ;;  %v574_v59 = vld [vmem:[%s1254_s3 + $0x10] sm:$0xff] }
 0x113   : > { %932 = vmatpush3.msra.mxu0 %v579_v47  ;;  %v513_v50 = vld [vmem:[#allocation2] sm:$0xff]  ;;  %v573_v62 = vld [vmem:[%s1254_s3 + $0x8] sm:$0xff] }
 0x114   : > { %933 = vmatprep.subr.mxu0 %v578_v48  ;;  %v576_v53 = vld [vmem:[%s1254_s3 + $0x20] sm:$0xff]  ;;  %v542_v54 = vadd.f32 %v876_v51, %v513_v50 }
 0x115   : > { %934 = vmatpush3.msra.mxu0 %v578_v48  ;;  %v572_v63 = vld [vmem:[%s1254_s3] sm:$0xff] }
 0x116   : > { %935 = vmatprep.subr.mxu0 %v577_v49  ;;  %v546_v57 = vmin.f32 %v542_v54, 20.0  ;;  %vm544_vm8 = vcmp.gt.f32.partialorder %v542_v54, 20.0  ;;  %v877_v20 = vld [vmem:[%s1255_s4] ss:$0 sm:$0xff] }
 0x117   : > { %v514_v52 = vld [vmem:[#allocation2 + $0x8] sm:$0xff]  ;;  %936 = vmatpush3.msra.mxu0 %v577_v49  ;;  %v880_v48 = vld [vmem:[%s1256_s5] ss:$0 sm:$0xff] }
 0x118   : > { %v543_v55 = vadd.f32 %v876_v51, %v514_v52  ;;  %937 = vmatprep.subr.mxu0 %v576_v53  ;;  %v548_v60 = vmul.f32 1.442695, %v546_v57 }
 0x119   : > { %938 = vmatpush3.msra.mxu0 %v576_v53 }
 0x11a   : > { %v547_v58 = vmin.f32 %v543_v55, 20.0  ;;  %939 = vmatprep.subr.mxu0 %v575_v56  ;;  %1005 = vpow2.f32 %v548_v60  ;;  %vm545_vm10 = vcmp.gt.f32.partialorder %v543_v55, 20.0 }
 0x11b   : > { %940 = vmatpush3.msra.mxu0 %v575_v56  ;;  %v516_v56 = vld [vmem:[#allocation3 + $0x8] sm:$0xff] }
 0x11c   : > { %v550_v61 = vmul.f32 1.442695, %v547_v58  ;;  %941 = vmatprep.subr.mxu0 %v574_v59  ;;  %v526_v57 = vadd.f32 1.0, %v516_v56  ;;  %v529_v60 = vmul.f32 -0.5, %v516_v56 }
 0x11d   : > { %942 = vmatpush3.msra.mxu0 %v574_v59 }
 0x11e   : > { %1007 = vpow2.f32 %v550_v61  ;;  %943 = vmatprep.subr.mxu0 %v573_v62 }
 0x11f   : > { %944 = vmatpush3.msra.mxu0 %v573_v62 }
 0x120   : > { %945 = vmatprep.subr.mxu0 %v572_v63 }
 0x121   : > { %946 = vmatpush3.msra.mxu0 %v572_v63 }
 0x127   : > { %v1006_v0 = vpop.eup %1005 }
 0x128   : > { %v552_v2 = vadd.f32 1.0, %v1006_v0  ;;  %v555_v4 = vmul.f32 -0.5, %v1006_v0  ;;  %v558_v7 = vand.u32 2147483647, %v1006_v0 }
 0x12a   : > { %1009 = vlog2.f32 %v552_v2  ;;  %v556_v6 = vadd.f32 1.0, %v555_v4  ;;  %vm559_vm7 = vcmp.lt.f32.partialorder %v558_v7, 0.0004427343 }
 0x12b   : > { %v1008_v1 = vpop.eup %1007 }
 0x12c   : > { %v561_v3 = vadd.f32 1.0, %v1008_v1  ;;  %v564_v5 = vmul.f32 -0.5, %v1008_v1  ;;  %v567_v9 = vand.u32 2147483647, %v1008_v1  ;;  %v557_v10 = vmul.f32 %v1006_v0, %v556_v6 }
 0x12e   : > { %1011 = vlog2.f32 %v561_v3  ;;  %v565_v8 = vadd.f32 1.0, %v564_v5  ;;  %vm568_vm9 = vcmp.lt.f32.partialorder %v567_v9, 0.0004427343  ;;  %v532_v3 = vand.u32 2147483647, %v516_v56 }
 0x130   : > { %v566_v12 = vmul.f32 %v1008_v1, %v565_v8  ;;  %v530_v1 = vadd.f32 1.0, %v529_v60  ;;  %vm533_vm1 = vcmp.lt.f32.partialorder %v532_v3, 0.0004427343 }
 0x132   : > { %v531_v6 = vmul.f32 %v530_v1, %v516_v56 }
 0x137   : > { %v1010_v11 = vpop.eup %1009 }
 0x138   : > { %v554_v14 = vmul.f32 0.6931472, %v1010_v11 }
 0x13a   : > { %v560_v16 = vsel %vm559_vm7, %v557_v10, %v554_v14 }
 0x13b   : > { %v1012_v13 = vpop.eup %1011  ;;  %v570_v17 = vsel %vm544_vm8, %v542_v54, %v560_v16  ;;  %v515_v54 = vld [vmem:[#allocation3] sm:$0xff] }
 0x13c   : > { %v563_v15 = vmul.f32 0.6931472, %v1012_v13  ;;  %947 = vmatprep.mubr.msk.f32.mxu0 %vm506_vm6, %v570_v17  ;;  %v520_v58 = vmul.f32 -0.5, %v515_v54  ;;  %v523_v62 = vand.u32 2147483647, %v515_v54 }
 0x13e   : > { %v569_v18 = vsel %vm568_vm9, %v566_v12, %v563_v15  ;;  %v521_v59 = vadd.f32 1.0, %v520_v58  ;;  %vm524_vm0 = vcmp.lt.f32.partialorder %v523_v62, 0.0004427343 }
 0x13f   : > { %v571_v19 = vsel %vm545_vm10, %v543_v55, %v569_v18  ;;  %v517_v55 = vadd.f32 1.0, %v515_v54 }
 0x140   : > { %948 = vmatmul.mubr.msk.f32.vlgmr.msra.gmra.mxu0 %vm506_vm6, %v571_v19  ;;  %v522_v0 = vmul.f32 %v521_v59, %v515_v54 }
 0x200   : > { %v949_v21 = vpop.f32.mrf.mxu0 }
 0x201   : > { %v665_v22 = vadd.f32 %v949_v21, %v877_v20 }
 0x202   : > { %v659_v23 = vpop.f32.mrf.mxu0 }
 0x203   : > { %v671_v24 = vmin.f32 %v665_v22, 20.0  ;;  %v660_v25 = vadd.f32 %v877_v20, %v659_v23  ;;  %vm669_vm13 = vcmp.gt.f32.partialorder %v665_v22, 20.0 }
 0x205   : > { %v674_v26 = vmul.f32 1.442695, %v671_v24  ;;  %v670_v27 = vmin.f32 %v660_v25, 20.0  ;;  %vm668_vm14 = vcmp.gt.f32.partialorder %v660_v25, 20.0 }
 0x207   : > { %1013 = vpow2.f32 %v674_v26  ;;  %v672_v28 = vmul.f32 1.442695, %v670_v27 }
 0x209   : > { %1015 = vpow2.f32 %v672_v28 }
 0x214   : > { %v1014_v29 = vpop.eup %1013 }
 0x215   : > { %v685_v30 = vadd.f32 1.0, %v1014_v29  ;;  %v688_v33 = vmul.f32 -0.5, %v1014_v29  ;;  %v691_v36 = vand.u32 2147483647, %v1014_v29 }
 0x216   : > { %v1016_v31 = vpop.eup %1015 }
 0x217   : > { %v676_v32 = vadd.f32 1.0, %v1016_v31  ;;  %1017 = vlog2.f32 %v685_v30  ;;  %v679_v34 = vmul.f32 -0.5, %v1016_v31  ;;  %v689_v35 = vadd.f32 1.0, %v688_v33 }
 0x218   : > { %v682_v39 = vand.u32 2147483647, %v1016_v31  ;;  %vm692_vm11 = vcmp.lt.f32.partialorder %v691_v36, 0.0004427343 }
 0x219   : > { %1019 = vlog2.f32 %v676_v32  ;;  %v680_v37 = vadd.f32 1.0, %v679_v34  ;;  %v690_v41 = vmul.f32 %v1014_v29, %v689_v35 }
 0x21a   : > { %vm683_vm12 = vcmp.lt.f32.partialorder %v682_v39, 0.0004427343  ;;  %1021 = vlog2.f32 %v517_v55 }
 0x21b   : > { %v681_v44 = vmul.f32 %v1016_v31, %v680_v37  ;;  %1023 = vlog2.f32 %v526_v57  ;;  %v881_v31 = vld [vmem:[#allocation4] ss:$0 sm:$0xff] }
 0x224   : > { %v1018_v38 = vpop.eup %1017 }
 0x225   : > { %v687_v40 = vmul.f32 0.6931472, %v1018_v38 }
 0x226   : > { %v1020_v42 = vpop.eup %1019 }
 0x227   : > { %v678_v43 = vmul.f32 0.6931472, %v1020_v42  ;;  %v693_v45 = vsel %vm692_vm11, %v690_v41, %v687_v40  ;;  %v1022_v61 = vpop.eup %1021 }
 0x228   : > { %v695_v49 = vsel %vm669_vm13, %v665_v22, %v693_v45  ;;  %v519_v63 = vmul.f32 0.6931472, %v1022_v61  ;;  %v1024_v2 = vpop.eup %1023 }
 0x229   : > { %v684_v46 = vsel %vm683_vm12, %v681_v44, %v678_v43  ;;  %v704_v52 = vmul.f32 %v880_v48, %v695_v49  ;;  %v528_v5 = vmul.f32 0.6931472, %v1024_v2 }
 0x22a   : > { %v694_v47 = vsel %vm668_vm14, %v660_v25, %v684_v46  ;;  %v525_v4 = vsel %vm524_vm0, %v522_v0, %v519_v63 }
 0x22b   : > { %v703_v50 = vmul.f32 %v880_v48, %v694_v47  ;;  %v709_v53 = vsel %vm705_vm15, %v704_v52, 0.0  ;;  %v882_v7 = vadd.f32 -7.0, %v525_v4  ;;  %v534_v8 = vsel %vm533_vm1, %v531_v6, %v528_v5 }
 0x22c   : > { %v883_v10 = vadd.f32 -7.0, %v534_v8 }
 0x22d   : > { %v706_v51 = vsel %vm705_vm15, %v703_v50, 0.0  ;;  %v725_v9 = vmin.f32 %v882_v7, 20.0  ;;  %vm723_vm3 = vcmp.gt.f32.partialorder %v882_v7, 20.0 }
 0x22e   : > { %707 = vadd.xlane.f32.xlu0 %v706_v51  ;;  %v726_v12 = vmin.f32 %v883_v10, 20.0  ;;  %vm724_vm6 = vcmp.gt.f32.partialorder %v883_v10, 20.0 }
 0x22f   : > { %v727_v11 = vmul.f32 1.442695, %v725_v9 }
 0x230   : > { %v729_v13 = vmul.f32 1.442695, %v726_v12 }
 0x231   : > { %1025 = vpow2.f32 %v727_v11 }
 0x232   : > { %710 = vadd.xlane.f32.xlu0 %v709_v53  ;;  %1027 = vpow2.f32 %v729_v13 }
 0x23e   : > { %v1026_v14 = vpop.eup %1025 }
 0x23f   : > { %v731_v15 = vadd.f32 1.0, %v1026_v14  ;;  %v1028_v16 = vpop.eup %1027  ;;  %v734_v18 = vmul.f32 -0.5, %v1026_v14  ;;  %v737_v22 = vand.u32 2147483647, %v1026_v14 }
 0x240   : > { %v740_v17 = vadd.f32 1.0, %v1028_v16  ;;  %v743_v20 = vmul.f32 -0.5, %v1028_v16  ;;  %v746_v27 = vand.u32 2147483647, %v1028_v16 }
 0x241   : > { %1029 = vlog2.f32 %v731_v15  ;;  %v735_v19 = vadd.f32 1.0, %v734_v18  ;;  %vm738_vm2 = vcmp.lt.f32.partialorder %v737_v22, 0.0004427343 }
 0x242   : > { %1031 = vlog2.f32 %v740_v17  ;;  %v744_v25 = vadd.f32 1.0, %v743_v20  ;;  %vm747_vm4 = vcmp.lt.f32.partialorder %v746_v27, 0.0004427343 }
 0x243   : > { %v736_v24 = vmul.f32 %v1026_v14, %v735_v19 }
 0x244   : > { %v745_v30 = vmul.f32 %v1028_v16, %v744_v25 }
 0x24e   : > { %v1030_v21 = vpop.eup %1029 }
 0x24f   : > { %v733_v23 = vmul.f32 0.6931472, %v1030_v21  ;;  %v1032_v26 = vpop.eup %1031 }
 0x250   : > { %v742_v29 = vmul.f32 0.6931472, %v1032_v26 }
 0x251   : > { %v739_v28 = vsel %vm738_vm2, %v736_v24, %v733_v23 }
 0x252   : > { %v749_v32 = vsel %vm723_vm3, %v882_v7, %v739_v28  ;;  %v748_v35 = vsel %vm747_vm4, %v745_v30, %v742_v29 }
 0x253   : > { %v750_v37 = vsel %vm724_vm6, %v883_v10, %v748_v35 }
 0x2b7   : > { %v708_v33 = vpop.xlane.xlu0 %707 }
 0x2b8   : > { %v719_v34 = vadd.f32 %v881_v31, %v708_v33 }
 0x2ba   : > { %v751_v36 = vadd.f32 %v749_v32, %v719_v34 }
 0x2bb   : > { %v711_v38 = vpop.xlane.xlu0 %710 }
 0x2bc   : > { %v753_v39 = vadd.f32 7.0, %v751_v36  ;;  %v720_v40 = vadd.f32 %v881_v31, %v711_v38 }
 0x2be   : > { %v757_v41 = vmin.f32 %v753_v39, 20.0  ;;  %v752_v42 = vadd.f32 %v750_v37, %v720_v40  ;;  %vm755_vm8 = vcmp.gt.f32.partialorder %v753_v39, 20.0 }
 0x2c0   : > { %v759_v43 = vmul.f32 1.442695, %v757_v41  ;;  %v754_v44 = vadd.f32 7.0, %v752_v42 }
 0x2c2   : > { %1033 = vpow2.f32 %v759_v43  ;;  %v758_v45 = vmin.f32 %v754_v44, 20.0  ;;  %vm756_vm10 = vcmp.gt.f32.partialorder %v754_v44, 20.0 }
 0x2c4   : > { %v761_v46 = vmul.f32 1.442695, %v758_v45 }
 0x2c6   : > { %1035 = vpow2.f32 %v761_v46 }
 0x2cf   : > { %v1034_v47 = vpop.eup %1033 }
 0x2d0   : > { %v763_v48 = vadd.f32 1.0, %v1034_v47  ;;  %v766_v51 = vmul.f32 -0.5, %v1034_v47  ;;  %v769_v54 = vand.u32 2147483647, %v1034_v47 }
 0x2d2   : > { %1037 = vlog2.f32 %v763_v48  ;;  %v767_v52 = vadd.f32 1.0, %v766_v51  ;;  %vm770_vm7 = vcmp.lt.f32.partialorder %v769_v54, 0.0004427343 }
 0x2d3   : > { %v1036_v49 = vpop.eup %1035 }
 0x2d4   : > { %v772_v50 = vadd.f32 1.0, %v1036_v49  ;;  %v775_v53 = vmul.f32 -0.5, %v1036_v49  ;;  %v768_v57 = vmul.f32 %v1034_v47, %v767_v52  ;;  %v778_v59 = vand.u32 2147483647, %v1036_v49 }
 0x2d6   : > { %1039 = vlog2.f32 %v772_v50  ;;  %v776_v58 = vadd.f32 1.0, %v775_v53  ;;  %vm779_vm9 = vcmp.lt.f32.partialorder %v778_v59, 0.0004427343 }
 0x2d8   : > { %v777_v0 = vmul.f32 %v1036_v49, %v776_v58 }
 0x2df   : > { %v1038_v55 = vpop.eup %1037 }
 0x2e0   : > { %v765_v56 = vmul.f32 0.6931472, %v1038_v55 }
 0x2e2   : > { %v771_v60 = vsel %vm770_vm7, %v768_v57, %v765_v56 }
 0x2e3   : > { %v1040_v61 = vpop.eup %1039  ;;  %v781_v62 = vsel %vm755_vm8, %v753_v39, %v771_v60 }
 0x2e4   : > { %783 = vst.msk [vmem:[%s1258_s7] sm:$0xff] %vm391_vm5, %v781_v62  ;;  %v774_v63 = vmul.f32 0.6931472, %v1040_v61 }
 0x2e6   : > { %v780_v1 = vsel %vm779_vm9, %v777_v0, %v774_v63 }
 0x2e7   : > { %v782_v2 = vsel %vm756_vm10, %v754_v44, %v780_v1 }
 0x2e8   : > { %784 = vst.msk [vmem:[%s1258_s7 + $0x8] sm:$0xff] %vm391_vm5, %v782_v2 }
 0x2e9 PF: > { %s19_s30 = sadd.s32 1, %s1079_s30   ;;  %s1259_s26 = smov %s1067_s27 }
 0x2ea   : > { %p16_p11 = scmp.ge.s32.totalorder %s19_s30, 4   ;;  %s1260_s27 = smov %s1162_s10 }
 0x2eb   : > { %s1261_s28 = smov %s1075_s29  ;;  %s1262_s29 = smov %s1264_s6 }
 0x2ec   :  { %18 = sbr.rel (!%p16_p11) target bundleno = 6 (0x6), region = 133 }

</bundles_post_ra>
